<compile_context>
chip_gen: v7x
topology: tpu7x:2x2x1
jax: 0.10.0
libtpu: 0.0.40
codegen_flags: <defaults>
</compile_context>

<pallas_src>
import jax
import jax.numpy as jnp
from jax.experimental import pallas as pl
from jax.experimental.pallas import tpu as pltpu


def _net_kernel(x_ref, w_ref, b_ref, o_ref):
    # x_ref: (TB, 49, 512)  w_ref: (512, CPAD)  b_ref: (1, CPAD)  o_ref: (TB, CPAD)
    x = x_ref[...].astype(jnp.float32)

    # Global-average-pool over the 49 spatial positions.
    # The 1/49 scale is folded into w_ref by the wrapper, so a plain sum here.
    pooled = jnp.sum(x, axis=1)                                   # (TB, 512)

    # Linear layer on the MXU (f32 accumulate).
    logits = jnp.dot(pooled, w_ref[...].astype(jnp.float32),
                     preferred_element_type=jnp.float32)          # (TB, CPAD)
    logits = logits + b_ref[...].astype(jnp.float32)              # broadcast (1, CPAD)

    # Numerically-stable softmax over the (padded) class axis.  Padded columns
    # carry a -1e30 bias, so exp() underflows to exactly 0 and does not
    # perturb the denominator.
    m = jnp.max(logits, axis=1, keepdims=True)
    e = jnp.exp(logits - m)
    probs = e / jnp.sum(e, axis=1, keepdims=True)

    o_ref[...] = probs.astype(o_ref.dtype)


def net_forward(x_nchw, weight, bias, *, tb=None):
    """x_nchw: (B, 512, 7, 7); weight: (c, 512) (PyTorch layout); bias: (c,)."""
    B = x_nchw.shape[0]
    c = weight.shape[0]
    S = 7 * 7                                       # 49 spatial positions
    CPAD = ((c + 127) // 128) * 128                 # lane-dense class dim

    # Glue (pure JAX): x.view(-1, 512, 49) then put channels on lanes.
    x = x_nchw.reshape(B, 512, S).transpose(0, 2, 1)            # (B, 49, 512)

    # Fold pooling scale 1/49 into the (tiny, static) transposed weight, and
    # pad W / bias out to CPAD classes.  Padded bias = -1e30 -> softmax-safe.
    w_t = (weight.T.astype(jnp.float32)) / float(S)             # (512, c)
    w_pad = jnp.zeros((512, CPAD), jnp.float32).at[:, :c].set(w_t)
    b_pad = jnp.full((1, CPAD), -1e30, jnp.float32).at[0, :c].set(
        bias.astype(jnp.float32))

    # Batch tile: full batch if small, else a multiple-of-8 tile sized so that
    # double-buffered input tiles stay well inside v7x's 64 MiB VMEM.
    if tb is None:
        tb = B if B <= 128 else 64
    TB = tb
    grid = (pl.cdiv(B, TB),)

    in_bytes = B * 512 * S * x.dtype.itemsize
    cost = pl.CostEstimate(
        flops=2 * B * 512 * CPAD + B * 512 * S,
        transcendentals=B * CPAD,
        bytes_accessed=in_bytes + 512 * CPAD * 4 + (1 + B) * CPAD * 4,
    )

    out = pl.pallas_call(
        _net_kernel,
        out_shape=jax.ShapeDtypeStruct((B, CPAD), jnp.float32),
        grid=grid,
        in_specs=[
            pl.BlockSpec((TB, S, 512), lambda i: (i, 0, 0)),    # x tile
            pl.BlockSpec((512, CPAD), lambda i: (0, 0)),        # weight (resident)
            pl.BlockSpec((1, CPAD), lambda i: (0, 0)),          # bias   (resident)
        ],
        out_specs=pl.BlockSpec((TB, CPAD), lambda i: (i, 0)),
        compiler_params=pltpu.CompilerParams(
            dimension_semantics=("parallel",),                  # 2 TCs on v7x
            vmem_limit_bytes=64 * 1024 * 1024,
        ),
        cost_estimate=cost,
    )(x, w_pad, b_pad)

    return out[:, :c]


def _reference(x_nchw, weight, bias):
    x = x_nchw.reshape(-1, 512, 49).mean(axis=2)
    logits = x @ weight.T + bias
    return jax.nn.softmax(logits, axis=1)


if __name__ == "__main__":
    key = jax.random.PRNGKey(0)
    k_x, k_w, k_b = jax.random.split(key, 3)

    B, C_CLASSES = 2, 10
    # Input features (NCHW), as produced by the backbone feeding this head.
    x = jax.random.normal(k_x, (B, 512, 7, 7), dtype=jnp.float32)

    # Deterministic nn.Linear(512, c) init: U(-1/sqrt(512), 1/sqrt(512)).
    bound = 1.0 / jnp.sqrt(512.0)
    weight = jax.random.uniform(k_w, (C_CLASSES, 512), jnp.float32, -bound, bound)
    bias = jax.random.uniform(k_b, (C_CLASSES,), jnp.float32, -bound, bound)

    out = net_forward(x, weight, bias)
    out = jax.block_until_ready(out)

    ref = _reference(x, weight, bias)
    assert out.shape == (B, C_CLASSES)
    assert jnp.allclose(out, ref, atol=1e-5, rtol=1e-5), "mismatch vs reference"
    assert jnp.allclose(jnp.sum(out, axis=1), 1.0, atol=1e-5), "softmax rows must sum to 1"

    print("KERNEL_OK")
</pallas_src>

<mosaic_0001>
module attributes {stable_mosaic.version = 11 : i64} {
  func.func @_net_kernel(%arg0: i32, %arg1: memref<2x49x512xf32, #tpu.memory_space<vmem>>, %arg2: memref<512x128xf32, #tpu.memory_space<vmem>>, %arg3: memref<1x128xf32, #tpu.memory_space<vmem>>, %arg4: memref<2x128xf32, #tpu.memory_space<vmem>>) attributes {dimension_semantics = [#tpu.dimension_semantics<parallel>], iteration_bounds = array<i64: 1>, scalar_prefetch = 0 : i64, scratch_operands = 0 : i64, tpu.core_type = #tpu.core_type<tc>, window_params = [{transform_indices = @transform_0, window_bounds = array<i64: 2, 49, 512>}, {pipeline_mode = #tpu.pipeline_mode<synchronous>, transform_indices = @transform_1, window_bounds = array<i64: 512, 128>}, {pipeline_mode = #tpu.pipeline_mode<synchronous>, transform_indices = @transform_2, window_bounds = array<i64: 1, 128>}, {transform_indices = @transform_3, window_bounds = array<i64: 2, 128>}]} {
    %c0 = arith.constant 0 : index
    %c0_0 = arith.constant 0 : index
    %c0_1 = arith.constant 0 : index
    %0 = vector.load %arg1[%c0, %c0_0, %c0_1] : memref<2x49x512xf32, #tpu.memory_space<vmem>>, vector<2x49x512xf32>
    %cst = arith.constant dense<0.000000e+00> : vector<2x512xf32>
    %1 = vector.multi_reduction <add>, %0, %cst [1] : vector<2x49x512xf32> to vector<2x512xf32>
    %c0_2 = arith.constant 0 : index
    %c0_3 = arith.constant 0 : index
    %2 = vector.load %arg2[%c0_2, %c0_3] : memref<512x128xf32, #tpu.memory_space<vmem>>, vector<512x128xf32>
    %cst_4 = arith.constant dense<0.000000e+00> : vector<2x128xf32>
    %3 = tpu.matmul %1, %2, %cst_4 {dimension_numbers = #tpu.dot_dimension_numbers<[1], [0], [0], [1], [0, 0, 1, 1], [], []>} : vector<2x512xf32>, vector<512x128xf32>, vector<2x128xf32> -> vector<2x128xf32>
    %c0_5 = arith.constant 0 : index
    %c0_6 = arith.constant 0 : index
    %4 = vector.load %arg3[%c0_5, %c0_6] : memref<1x128xf32, #tpu.memory_space<vmem>>, vector<1x128xf32>
    %5 = vector.broadcast %4 : vector<1x128xf32> to vector<2x128xf32>
    %6 = arith.addf %3, %5 : vector<2x128xf32>
    %cst_7 = arith.constant dense<0xFF800000> : vector<2xf32>
    %7 = vector.multi_reduction <maximumf>, %6, %cst_7 [1] : vector<2x128xf32> to vector<2xf32>
    %8 = vector.shape_cast %7 : vector<2xf32> to vector<2x1xf32>
    %9 = vector.broadcast %8 : vector<2x1xf32> to vector<2x128xf32>
    %10 = arith.subf %6, %9 : vector<2x128xf32>
    %11 = math.exp %10 : vector<2x128xf32>
    %cst_8 = arith.constant dense<0.000000e+00> : vector<2xf32>
    %12 = vector.multi_reduction <add>, %11, %cst_8 [1] : vector<2x128xf32> to vector<2xf32>
    %13 = vector.shape_cast %12 : vector<2xf32> to vector<2x1xf32>
    %14 = vector.broadcast %13 : vector<2x1xf32> to vector<2x128xf32>
    %15 = arith.divf %11, %14 : vector<2x128xf32>
    %c0_9 = arith.constant 0 : index
    %c0_10 = arith.constant 0 : index
    %16 = vector.load %arg4[%c0_9, %c0_10] : memref<2x128xf32, #tpu.memory_space<vmem>>, vector<2x128xf32>
    tpu.vector_store %arg4[%c0_9, %c0_10], %15 {strides = array<i32>} : memref<2x128xf32, #tpu.memory_space<vmem>>, vector<2x128xf32>,
    return
  }
  func.func @transform_0(%arg0: i32) -> (i32, i32, i32) {
    %c0_i32 = arith.constant 0 : i32
    %c0_i32_0 = arith.constant 0 : i32
    %c0_i32_1 = arith.constant 0 : i32
    return %arg0, %c0_i32, %c0_i32_0 : i32, i32, i32
  }
  func.func @transform_1(%arg0: i32) -> (i32, i32) {
    %c0_i32 = arith.constant 0 : i32
    %c0_i32_0 = arith.constant 0 : i32
    %c0_i32_1 = arith.constant 0 : i32
    return %c0_i32, %c0_i32_0 : i32, i32
  }
  func.func @transform_2(%arg0: i32) -> (i32, i32) {
    %c0_i32 = arith.constant 0 : i32
    %c0_i32_0 = arith.constant 0 : i32
    %c0_i32_1 = arith.constant 0 : i32
    return %c0_i32, %c0_i32_0 : i32, i32
  }
  func.func @transform_3(%arg0: i32) -> (i32, i32) {
    %c0_i32 = arith.constant 0 : i32
    %c0_i32_0 = arith.constant 0 : i32
    return %arg0, %c0_i32 : i32, i32
  }
}

</mosaic_0001>

<bundles_post_ra>
// kernel: tpu_custom_call.1
= control target key start
LH: loop header
LB: loop body
LE: loop exit
PB: predicated region body
PF: predicated region fallthrough
CT: control target
= control target key end

     0   :  { %8 = vsyncpa [#allocation3], 0  ;;  %s804_s0 = inlined_call_operand.hbm [shape: f32[2,49,512], index: 0, kind: input, shape index: {}]   ;;  %s805_s1 = inlined_call_operand.hbm [shape: f32[512,128], index: 1, kind: input, shape index: {}]   ;;  %s806_s2 = inlined_call_operand.hbm [shape: f32[1,128], index: 2, kind: input, shape index: {}]   ;;  %s807_s3 = inlined_call_operand.hbm [shape: f32[2,128], index: 3, kind: output, shape index: {}]  }
   0x1   :  { %9 = vsyncpa [#allocation6], 0 }
   0x2   :  { %10 = vsyncpa [#allocation4], 0  ;;  %s713_s12 = smov [#allocation5]   ;;  %s619_s16 = scalar_lea.hbm %s805_s1, 8192 }
   0x3   :  { %s28_s13 = sshll.u32 %s713_s12, 4  ;;  %p620_p0 = scmp.ne.s32.totalorder %s805_s1, %s619_s16  ;;  %s29_s13 = int_to_ptr.vmem [resolvable:$true] %s28_s13 }
   0x4   :  { %p623_p1 = scmp.lt.u32.totalorder %s619_s16, %s805_s1 }
   0x6   :  { %p625_p2 = pnand %p623_p1, %p620_p0 }
   0x8   :  { %628 = shalt.err (!%p625_p2)
}
   0x9   :  { %s629_s21 = scalar_lea.vmem %s29_s13, 8192  ;;  %p634_p4 = scmp.lt.s32.totalorder %s29_s13, %s29_s13 }
   0xa   :  { %p630_p3 = scmp.ne.s32.totalorder %s29_s13, %s629_s21  ;;  %p635_p5 = scmp.lt.s32.totalorder %s629_s21, %s629_s21 }
   0xc   :  { %p636_p6 = por %p635_p5, %p634_p4 }
   0xe   :  { %p637_p7 = pnand %p636_p6, %p630_p3 }
  0x10   :  { %640 = shalt.err (!%p637_p7)
}
  0x11   :  { %s714_s22 = smov 128   ;;  %s715_s23 = smov 8  }
  0x12   :  { %34 = dma.hbm_to_vmem [thread:$0]  %s805_s1, 8192, %s29_s13, [#allocation6], %s714_s22, %s714_s22, %s715_s23  }
  0x13   :  { %s716_s26 = smov [#allocation2]   ;;  %s641_s30 = scalar_lea.hbm %s804_s0, 7168 }
  0x14   :  { %s16_s27 = sshll.u32 %s716_s26, 4  ;;  %p642_p8 = scmp.ne.s32.totalorder %s804_s0, %s641_s30  ;;  %s17_s27 = int_to_ptr.vmem [resolvable:$true] %s16_s27 }
  0x15   :  { %p645_p9 = scmp.lt.u32.totalorder %s641_s30, %s804_s0 }
  0x17   :  { %p647_p10 = pnand %p645_p9, %p642_p8 }
  0x19   :  { %650 = shalt.err (!%p647_p10)
}
  0x1a   :  { %s651_s8 = scalar_lea.vmem %s17_s27, 7168  ;;  %p656_p12 = scmp.lt.s32.totalorder %s17_s27, %s17_s27 }
  0x1b   :  { %p652_p11 = scmp.ne.s32.totalorder %s17_s27, %s651_s8  ;;  %p657_p13 = scmp.lt.s32.totalorder %s651_s8, %s651_s8 }
  0x1d   :  { %p658_p0 = por %p657_p13, %p656_p12 }
  0x1f   :  { %p659_p1 = pnand %p658_p0, %p652_p11 }
  0x21   :  { %662 = shalt.err (!%p659_p1)
}
  0x22   :  { %s717_s1 = smov 512   ;;  %s718_s9 = smov 32  }
  0x23   :  { %22 = dma.hbm_to_vmem [thread:$0]  %s804_s0, 7168, %s17_s27, [#allocation3], %s717_s1, %s717_s1, %s718_s9  }
  0x24   :  { %s719_s12 = smov [#allocation7]   ;;  %s663_s16 = scalar_lea.hbm %s806_s2, 16 }
  0x25   :  { %s41_s13 = sshll.u32 %s719_s12, 4  ;;  %p664_p2 = scmp.ne.s32.totalorder %s806_s2, %s663_s16  ;;  %s42_s13 = int_to_ptr.vmem [resolvable:$true] %s41_s13 }
  0x26   :  { %p667_p3 = scmp.lt.u32.totalorder %s663_s16, %s806_s2 }
  0x28   :  { %p669_p4 = pnand %p667_p3, %p664_p2 }
  0x2a   :  { %672 = shalt.err (!%p669_p4)
}
  0x2b   :  { %s673_s21 = scalar_lea.vmem %s42_s13, 16  ;;  %s677_s0 = scalar_lea.vmem %s42_s13, 32 }
  0x2c   :  { %p674_p5 = scmp.ne.s32.totalorder %s42_s13, %s673_s21  ;;  %p678_p6 = scmp.lt.s32.totalorder %s42_s13, %s42_s13 }
  0x2d   :  { %p679_p7 = scmp.lt.s32.totalorder %s677_s0, %s673_s21 }
  0x2f   :  { %p680_p8 = por %p679_p7, %p678_p6 }
  0x31   :  { %p681_p9 = pnand %p680_p8, %p674_p5 }
  0x33   :  { %684 = shalt.err (!%p681_p9)
}
  0x34   :  { %44 = dma.hbm_to_vmem [thread:$0]  %s806_s2, 16, %s42_s13, [#allocation6]  }
  0x35   :  { %707 = dma.done.wait [#allocation3], 7168  }
  0x36   :  { %708 = vsyncadd [#allocation3], 4294960128 }
  0x37   :  { %709 = dma.done.wait [#allocation6], 8208  }
  0x38   :  { %710 = vsyncadd [#allocation6], 4294959088  ;;  %v231_v0 = vld [vmem:[#allocation5 + $0x80] sm:$0xff]  ;;  %v232_v1 = vld [vmem:[#allocation5 + $0x88] sm:$0xff]  ;;  %vm115_vm0 = vcmask 1040384   ;;  %vm294_vm1 = vcmask 1041409  }
  0x39   :  { %v215_v2 = vld [vmem:[#allocation5] sm:$0xff]  ;;  %v543_v3 = vpack.c.bf16 %v232_v1, %v231_v0  ;;  %v216_v4 = vld [vmem:[#allocation5 + $0x8] sm:$0xff]  ;;  %v233_v11 = vld [vmem:[#allocation5 + $0x90] sm:$0xff]  ;;  %vm443_vm2 = vcmask 1041408   ;;  %s720_s2 = smov [#allocation8]  }
  0x3a   :  { %v263_v5 = vld [vmem:[#allocation5 + $0x180] sm:$0xff]  ;;  %v264_v6 = vld [vmem:[#allocation5 + $0x188] sm:$0xff]  ;;  %v545_v7 = vpack.c.bf16 %v216_v4, %v215_v2  ;;  %v234_v13 = vld [vmem:[#allocation5 + $0x98] sm:$0xff]  ;;  %s462_s24 = sshll.u32 %s720_s2, 4  ;;  %s463_s24 = int_to_ptr.vmem [resolvable:$true] %s462_s24 }
  0x3b   :  { %v575_v8 = vpack.c.bf16 %v264_v6, %v263_v5  ;;  %v247_v9 = vld [vmem:[#allocation5 + $0x100] sm:$0xff]  ;;  %v248_v10 = vld [vmem:[#allocation5 + $0x108] sm:$0xff]  ;;  %544 = vmatprep.subr.bf16.mxu0 %v543_v3  ;;  %v217_v14 = vld [vmem:[#allocation5 + $0x10] sm:$0xff]  ;;  %v547_v16 = vpack.c.bf16 %v234_v13, %v233_v11  ;;  %s685_s25 = scalar_lea.vmem %s463_s24, 32  ;;  %p690_p11 = scmp.lt.s32.totalorder %s463_s24, %s463_s24 }
  0x3c   :  { %v577_v12 = vpack.c.bf16 %v248_v10, %v247_v9  ;;  %v218_v15 = vld [vmem:[#allocation5 + $0x18] sm:$0xff]  ;;  %546 = vmatpush3.bf16.msra.mxu0 %v545_v7  ;;  %v265_v18 = vld [vmem:[#allocation5 + $0x190] sm:$0xff]  ;;  %v235_v23 = vld [vmem:[#allocation5 + $0xa0] sm:$0xff]  ;;  %p686_p10 = scmp.ne.s32.totalorder %s463_s24, %s685_s25  ;;  %p691_p12 = scmp.lt.s32.totalorder %s685_s25, %s685_s25 }
  0x3d   :  { %576 = vmatprep.subr.bf16.mxu1 %v575_v8  ;;  %v549_v17 = vpack.c.bf16 %v218_v15, %v217_v14  ;;  %v266_v19 = vld [vmem:[#allocation5 + $0x198] sm:$0xff]  ;;  %v249_v20 = vld [vmem:[#allocation5 + $0x110] sm:$0xff]  ;;  %v236_v24 = vld [vmem:[#allocation5 + $0xa8] sm:$0xff]  ;;  %548 = vmatprep.subr.bf16.mxu0 %v547_v16 }
  0x3e   :  { %578 = vmatpush3.bf16.msra.mxu1 %v577_v12  ;;  %v579_v21 = vpack.c.bf16 %v266_v19, %v265_v18  ;;  %v250_v22 = vld [vmem:[#allocation5 + $0x118] sm:$0xff]  ;;  %v551_v26 = vpack.c.bf16 %v236_v24, %v235_v23  ;;  %v219_v27 = vld [vmem:[#allocation5 + $0x20] sm:$0xff]  ;;  %v220_v28 = vld [vmem:[#allocation5 + $0x28] sm:$0xff]  ;;  %p692_p13 = por %p691_p12, %p690_p11 }
  0x3f   :  { %v581_v25 = vpack.c.bf16 %v250_v22, %v249_v20  ;;  %v267_v29 = vld [vmem:[#allocation5 + $0x1a0] sm:$0xff]  ;;  %v268_v30 = vld [vmem:[#allocation5 + $0x1a8] sm:$0xff]  ;;  %v553_v33 = vpack.c.bf16 %v220_v28, %v219_v27  ;;  %v237_v35 = vld [vmem:[#allocation5 + $0xb0] sm:$0xff] }
  0x40   :  { %580 = vmatprep.subr.bf16.mxu1 %v579_v21  ;;  %v251_v31 = vld [vmem:[#allocation5 + $0x120] sm:$0xff]  ;;  %v252_v32 = vld [vmem:[#allocation5 + $0x128] sm:$0xff]  ;;  %550 = vmatpush3.bf16.msra.mxu0 %v549_v17  ;;  %v583_v34 = vpack.c.bf16 %v268_v30, %v267_v29  ;;  %v238_v36 = vld [vmem:[#allocation5 + $0xb8] sm:$0xff]  ;;  %p693_p0 = pnand %p692_p13, %p686_p10 }
  0x41   :  { %v221_v37 = vld [vmem:[#allocation5 + $0x30] sm:$0xff]  ;;  %552 = vmatprep.subr.bf16.mxu0 %v551_v26  ;;  %v585_v38 = vpack.c.bf16 %v252_v32, %v251_v31  ;;  %v555_v39 = vpack.c.bf16 %v238_v36, %v237_v35  ;;  %v222_v40 = vld [vmem:[#allocation5 + $0x38] sm:$0xff]  ;;  %v239_v46 = vld [vmem:[#allocation5 + $0xc0] sm:$0xff] }
  0x42   :  { %582 = vmatpush3.bf16.msra.mxu1 %v581_v25  ;;  %v269_v41 = vld [vmem:[#allocation5 + $0x1b0] sm:$0xff]  ;;  %v270_v42 = vld [vmem:[#allocation5 + $0x1b8] sm:$0xff]  ;;  %v240_v47 = vld [vmem:[#allocation5 + $0xc8] sm:$0xff]  ;;  %v557_v48 = vpack.c.bf16 %v222_v40, %v221_v37 }
  0x43   :  { %584 = vmatprep.subr.bf16.mxu1 %v583_v34  ;;  %v587_v43 = vpack.c.bf16 %v270_v42, %v269_v41  ;;  %v253_v44 = vld [vmem:[#allocation5 + $0x130] sm:$0xff]  ;;  %v254_v45 = vld [vmem:[#allocation5 + $0x138] sm:$0xff]  ;;  %v271_v49 = vld [vmem:[#allocation5 + $0x1c0] sm:$0xff]  ;;  %v559_v52 = vpack.c.bf16 %v240_v47, %v239_v46 }
  0x44   :  { %554 = vmatpush3.bf16.msra.mxu0 %v553_v33  ;;  %v272_v50 = vld [vmem:[#allocation5 + $0x1c8] sm:$0xff]  ;;  %v589_v51 = vpack.c.bf16 %v254_v45, %v253_v44  ;;  %v223_v53 = vld [vmem:[#allocation5 + $0x40] sm:$0xff]  ;;  %v241_v58 = vld [vmem:[#allocation5 + $0xd0] sm:$0xff] }
  0x45   :  { %556 = vmatprep.subr.bf16.mxu0 %v555_v39  ;;  %v224_v54 = vld [vmem:[#allocation5 + $0x48] sm:$0xff]  ;;  %v255_v55 = vld [vmem:[#allocation5 + $0x140] sm:$0xff]  ;;  %v591_v56 = vpack.c.bf16 %v272_v50, %v271_v49  ;;  %v242_v59 = vld [vmem:[#allocation5 + $0xd8] sm:$0xff] }
  0x46   :  { %586 = vmatpush3.bf16.msra.mxu1 %v585_v38  ;;  %v256_v57 = vld [vmem:[#allocation5 + $0x148] sm:$0xff]  ;;  %v273_v60 = vld [vmem:[#allocation5 + $0x1d0] sm:$0xff]  ;;  %v274_v61 = vld [vmem:[#allocation5 + $0x1d8] sm:$0xff]  ;;  %v561_v62 = vpack.c.bf16 %v224_v54, %v223_v53  ;;  %v563_v0 = vpack.c.bf16 %v242_v59, %v241_v58 }
  0x47   :  { %588 = vmatprep.subr.bf16.mxu1 %v587_v43  ;;  %v593_v63 = vpack.c.bf16 %v256_v57, %v255_v55  ;;  %v225_v1 = vld [vmem:[#allocation5 + $0x50] sm:$0xff]  ;;  %v226_v2 = vld [vmem:[#allocation5 + $0x58] sm:$0xff]  ;;  %v595_v4 = vpack.c.bf16 %v274_v61, %v273_v60  ;;  %v243_v6 = vld [vmem:[#allocation5 + $0xe0] sm:$0xff] }
  0x48   :  { %558 = vmatpush3.bf16.msra.mxu0 %v557_v48  ;;  %v257_v3 = vld [vmem:[#allocation5 + $0x150] sm:$0xff]  ;;  %v258_v5 = vld [vmem:[#allocation5 + $0x158] sm:$0xff]  ;;  %v244_v7 = vld [vmem:[#allocation5 + $0xe8] sm:$0xff]  ;;  %v565_v12 = vpack.c.bf16 %v226_v2, %v225_v1 }
  0x49   :  { %560 = vmatprep.subr.bf16.mxu0 %v559_v52  ;;  %v227_v8 = vld [vmem:[#allocation5 + $0x60] sm:$0xff]  ;;  %v228_v9 = vld [vmem:[#allocation5 + $0x68] sm:$0xff]  ;;  %v245_v15 = vld [vmem:[#allocation5 + $0xf0] sm:$0xff]  ;;  %v597_v16 = vpack.c.bf16 %v258_v5, %v257_v3  ;;  %v567_v17 = vpack.c.bf16 %v244_v7, %v243_v6 }
  0x4a   :  { %590 = vmatpush3.bf16.msra.mxu1 %v589_v51  ;;  %v275_v10 = vld [vmem:[#allocation5 + $0x1e0] sm:$0xff]  ;;  %v276_v11 = vld [vmem:[#allocation5 + $0x1e8] sm:$0xff]  ;;  %v246_v18 = vld [vmem:[#allocation5 + $0xf8] sm:$0xff]  ;;  %v569_v31 = vpack.c.bf16 %v228_v9, %v227_v8 }
  0x4b   :  { %592 = vmatprep.subr.bf16.mxu1 %v591_v56  ;;  %v259_v13 = vld [vmem:[#allocation5 + $0x160] sm:$0xff]  ;;  %v260_v14 = vld [vmem:[#allocation5 + $0x168] sm:$0xff]  ;;  %v599_v21 = vpack.c.bf16 %v276_v11, %v275_v10  ;;  %v277_v22 = vld [vmem:[#allocation5 + $0x1f0] sm:$0xff]  ;;  %v571_v37 = vpack.c.bf16 %v246_v18, %v245_v15 }
  0x4c   :  { %562 = vmatpush3.bf16.msra.mxu0 %v561_v62  ;;  %v55_v19 = vld [vmem:[#allocation2 + $0x8] sm:$0xff]  ;;  %v278_v23 = vld [vmem:[#allocation5 + $0x1f8] sm:$0xff]  ;;  %v229_v26 = vld [vmem:[#allocation5 + $0x70] sm:$0xff]  ;;  %v601_v36 = vpack.c.bf16 %v260_v14, %v259_v13 }
  0x4d   :  { %564 = vmatprep.subr.bf16.mxu0 %v563_v0  ;;  %v59_v20 = vld [vmem:[#allocation2 + $0x28] sm:$0xff]  ;;  %v230_v27 = vld [vmem:[#allocation5 + $0x78] sm:$0xff]  ;;  %v777_v28 = vld [vmem:[#allocation5 + $0x170] sm:$0xff]  ;;  %v603_v42 = vpack.c.bf16 %v278_v23, %v277_v22 }
  0x4e   :  { %594 = vmatpush3.bf16.msra.mxu1 %v593_v63  ;;  %v63_v24 = vld [vmem:[#allocation2 + $0x48] sm:$0xff]  ;;  %v124_v25 = vadd.f32 %v59_v20, %v55_v19  ;;  %v262_v32 = vld [vmem:[#allocation5 + $0x178] sm:$0xff]  ;;  %v54_v44 = vld [vmem:[#allocation2] sm:$0xff]  ;;  %v573_v51 = vpack.c.bf16 %v230_v27, %v229_v26 }
  0x4f   :  { %596 = vmatprep.subr.bf16.mxu1 %v595_v4  ;;  %v67_v29 = vld [vmem:[#allocation2 + $0x68] sm:$0xff]  ;;  %v58_v45 = vld [vmem:[#allocation2 + $0x20] sm:$0xff]  ;;  %v605_v52 = vpack.c.bf16 %v262_v32, %v777_v28  ;;  %v57_v5 = vld [vmem:[#allocation2 + $0x18] sm:$0xff] }
  0x50   :  { %v83_v30 = vld [vmem:[#allocation2 + $0xe8] sm:$0xff]  ;;  %566 = vmatpush3.bf16.msra.mxu0 %v565_v12  ;;  %v125_v35 = vadd.f32 %v124_v25, %v63_v24  ;;  %v62_v46 = vld [vmem:[#allocation2 + $0x40] sm:$0xff]  ;;  %v110_v50 = vadd.f32 %v58_v45, %v54_v44  ;;  %v61_v10 = vld [vmem:[#allocation2 + $0x38] sm:$0xff] }
  0x51   :  { %v87_v33 = vld [vmem:[#allocation2 + $0x108] sm:$0xff]  ;;  %568 = vmatprep.subr.bf16.mxu0 %v567_v17  ;;  %v66_v55 = vld [vmem:[#allocation2 + $0x60] sm:$0xff]  ;;  %v65_v11 = vld [vmem:[#allocation2 + $0x58] sm:$0xff]  ;;  %v150_v17 = vadd.f32 %v61_v10, %v57_v5 }
  0x52   :  { %v91_v34 = vld [vmem:[#allocation2 + $0x128] sm:$0xff]  ;;  %598 = vmatpush3.bf16.msra.mxu1 %v597_v16  ;;  %v176_v41 = vadd.f32 %v87_v33, %v83_v30  ;;  %v126_v43 = vadd.f32 %v125_v35, %v67_v29  ;;  %v82_v56 = vld [vmem:[#allocation2 + $0xe0] sm:$0xff]  ;;  %v111_v63 = vadd.f32 %v110_v50, %v62_v46  ;;  %v69_v15 = vld [vmem:[#allocation2 + $0x78] sm:$0xff] }
  0x53   :  { %v71_v38 = vld [vmem:[#allocation2 + $0x88] sm:$0xff]  ;;  %600 = vmatprep.subr.bf16.mxu1 %v599_v21  ;;  %v86_v57 = vld [vmem:[#allocation2 + $0x100] sm:$0xff]  ;;  %v81_v16 = vld [vmem:[#allocation2 + $0xd8] sm:$0x1]  ;;  %v151_v30 = vadd.f32 %v150_v17, %v65_v11 }
  0x54   :  { %v79_v39 = vld [vmem:[#allocation2 + $0xc8] sm:$0x1]  ;;  %v177_v49 = vadd.f32 %v176_v41, %v91_v34  ;;  %570 = vmatpush3.bf16.msra.mxu0 %v569_v31  ;;  %v127_v54 = vadd.f32 %v126_v43, %v71_v38  ;;  %v70_v61 = vld [vmem:[#allocation2 + $0x80] sm:$0xff]  ;;  %v163_v0 = vadd.f32 %v86_v57, %v82_v56  ;;  %v112_v8 = vadd.f32 %v111_v63, %v66_v55  ;;  %v85_v22 = vld [vmem:[#allocation2 + $0xf8] sm:$0xff] }
  0x55   :  { %v95_v40 = vld [vmem:[#allocation2 + $0x148] sm:$0xff]  ;;  %572 = vmatprep.subr.bf16.mxu0 %v571_v37  ;;  %v129_v59 = vsel %vm115_vm0, %v79_v39, 0.0  ;;  %v90_v62 = vld [vmem:[#allocation2 + $0x120] sm:$0xff]  ;;  %v89_v23 = vld [vmem:[#allocation2 + $0x118] sm:$0xff]  ;;  %v152_v41 = vadd.f32 %v151_v30, %v69_v15 }
  0x56   :  { %v75_v47 = vld [vmem:[#allocation2 + $0xa8] sm:$0xff]  ;;  %602 = vmatpush3.bf16.msra.mxu1 %v601_v36  ;;  %v178_v60 = vadd.f32 %v177_v49, %v95_v40  ;;  %v74_v2 = vld [vmem:[#allocation2 + $0xa0] sm:$0xff]  ;;  %v164_v9 = vadd.f32 %v163_v0, %v90_v62  ;;  %v113_v19 = vadd.f32 %v112_v8, %v70_v61  ;;  %v93_v24 = vld [vmem:[#allocation2 + $0x138] sm:$0xff]  ;;  %v202_v31 = vadd.f32 %v89_v23, %v85_v22 }
  0x57   :  { %v99_v48 = vld [vmem:[#allocation2 + $0x168] sm:$0xff]  ;;  %604 = vmatprep.subr.bf16.mxu1 %v603_v42  ;;  %v128_v1 = vadd.f32 %v127_v54, %v75_v47  ;;  %v78_v3 = vld [vmem:[#allocation2 + $0xc0] sm:$0x1]  ;;  %v73_v28 = vld [vmem:[#allocation2 + $0x98] sm:$0xff]  ;;  %v155_v36 = vsel %vm115_vm0, %v81_v16, 0.0 }
  0x58   :  { %v103_v53 = vld [vmem:[#allocation2 + $0x188] sm:$0xff]  ;;  %v94_v4 = vld [vmem:[#allocation2 + $0x140] sm:$0xff]  ;;  %v179_v6 = vadd.f32 %v178_v60, %v99_v48  ;;  %574 = vmatpush3.bf16.msra.mxu0 %v573_v51  ;;  %v116_v20 = vsel %vm115_vm0, %v78_v3, 0.0  ;;  %v97_v29 = vld [vmem:[#allocation2 + $0x158] sm:$0xff]  ;;  %v114_v33 = vadd.f32 %v113_v19, %v74_v2  ;;  %v203_v42 = vadd.f32 %v202_v31, %v93_v24 }
  0x59   :  { %v107_v58 = vld [vmem:[#allocation2 + $0x1a8] sm:$0x1]  ;;  %v106_v7 = vld [vmem:[#allocation2 + $0x1a0] sm:$0x1]  ;;  %v130_v12 = vadd.f32 %v129_v59, %v128_v1  ;;  %v165_v21 = vadd.f32 %v164_v9, %v94_v4  ;;  %v109_v35 = vld [vmem:[#allocation2 + $0x1b8] sm:$0x1] }
  0x5a   :  { %v181_v13 = vsel %vm115_vm0, %v107_v58, 0.0  ;;  %v98_v14 = vld [vmem:[#allocation2 + $0x160] sm:$0xff]  ;;  %606 = vmatpush3.bf16.msra.mxu1 %v605_v52  ;;  %v180_v18 = vadd.f32 %v179_v6, %v103_v53  ;;  %v168_v27 = vsel %vm115_vm0, %v106_v7, 0.0  ;;  %v56_v37 = vld [vmem:[#allocation2 + $0x10] sm:$0xff]  ;;  %v77_v40 = vld [vmem:[#allocation2 + $0xb8] sm:$0xff]  ;;  %v207_v43 = vsel %vm115_vm0, %v109_v35, 0.0 }
  0x5b   :  { %v131_v25 = vrot.slane %v130_v12, 4  ;;  %v102_v26 = vld [vmem:[#allocation2 + $0x180] sm:$0xff]  ;;  %v166_v34 = vadd.f32 %v165_v21, %v98_v14  ;;  %v60_v38 = vld [vmem:[#allocation2 + $0x30] sm:$0xff]  ;;  %v117_v46 = vadd.f32 %v116_v20, %v114_v33  ;;  %v101_v48 = vld [vmem:[#allocation2 + $0x178] sm:$0xff]  ;;  %v153_v53 = vadd.f32 %v152_v41, %v73_v28 }
  0x5c   :  { %v182_v32 = vadd.f32 %v181_v13, %v180_v18  ;;  %v64_v44 = vld [vmem:[#allocation2 + $0x50] sm:$0xff]  ;;  %v137_v51 = vadd.f32 %v60_v38, %v56_v37  ;;  %v204_v54 = vadd.f32 %v203_v42, %v97_v29  ;;  %v105_v61 = vld [vmem:[#allocation2 + $0x198] sm:$0xff] }
  0x5d   :  { %v132_v39 = vadd.f32 %v131_v25, %v130_v12  ;;  %v167_v47 = vadd.f32 %v166_v34, %v102_v26  ;;  %v80_v49 = vld [vmem:[#allocation2 + $0xd0] sm:$0x1]  ;;  %v118_v59 = vrot.slane %v117_v46, 4  ;;  %v154_v1 = vadd.f32 %v153_v53, %v77_v40 }
  0x5e   :  { %v183_v45 = vrot.slane %v182_v32, 4  ;;  %v84_v50 = vld [vmem:[#allocation2 + $0xf0] sm:$0xff]  ;;  %v142_v57 = vsel %vm115_vm0, %v80_v49, 0.0  ;;  %v138_v63 = vadd.f32 %v137_v51, %v64_v44  ;;  %v205_v2 = vadd.f32 %v204_v54, %v101_v48 }
  0x5f   :  { %v133_v52 = vrot.slane %v132_v39, 2  ;;  %v68_v55 = vld [vmem:[#allocation2 + $0x70] sm:$0xff]  ;;  %v169_v60 = vadd.f32 %v168_v27, %v167_v47  ;;  %v119_v6 = vadd.f32 %v118_v59, %v117_v46  ;;  %v156_v11 = vadd.f32 %v155_v36, %v154_v1 }
  0x60   :  { %v88_v56 = vld [vmem:[#allocation2 + $0x110] sm:$0xff]  ;;  %v184_v58 = vadd.f32 %v183_v45, %v182_v32  ;;  %v139_v9 = vadd.f32 %v138_v63, %v68_v55  ;;  %v206_v12 = vadd.f32 %v205_v2, %v105_v61 }
  0x61   :  { %v92_v62 = vld [vmem:[#allocation2 + $0x130] sm:$0xff]  ;;  %v134_v0 = vadd.f32 %v133_v52, %v132_v39  ;;  %v189_v4 = vadd.f32 %v88_v56, %v84_v50  ;;  %v170_v7 = vrot.slane %v169_v60, 4  ;;  %v120_v16 = vrot.slane %v119_v6, 2 }
  0x62   :  { %v72_v3 = vld [vmem:[#allocation2 + $0x90] sm:$0xff]  ;;  %v185_v5 = vrot.slane %v184_v58, 2  ;;  %v157_v22 = vrot.slane %v156_v11, 4  ;;  %v208_v23 = vadd.f32 %v207_v43, %v206_v12 }
  0x63   :  { %v96_v8 = vld [vmem:[#allocation2 + $0x150] sm:$0xff]  ;;  %v135_v10 = vrot.slane %v134_v0, 1  ;;  %v190_v14 = vadd.f32 %v189_v4, %v92_v62  ;;  %v171_v17 = vadd.f32 %v170_v7, %v169_v60  ;;  %v140_v20 = vadd.f32 %v139_v9, %v72_v3  ;;  %v472_v7 = vld [vmem:[#allocation7] ss:$0 sm:$0xff] }
  0x64   :  { %v76_v13 = vld [vmem:[#allocation2 + $0xb0] sm:$0xff]  ;;  %v186_v15 = vadd.f32 %v185_v5, %v184_v58  ;;  %v121_v26 = vadd.f32 %v120_v16, %v119_v6  ;;  %v158_v30 = vadd.f32 %v157_v22, %v156_v11  ;;  %v209_v31 = vrot.slane %v208_v23, 4 }
  0x65   :  { %v100_v18 = vld [vmem:[#allocation2 + $0x170] sm:$0xff]  ;;  %v136_v21 = vadd.f32 %v135_v10, %v134_v0  ;;  %v191_v24 = vadd.f32 %v190_v14, %v96_v8  ;;  %v172_v27 = vrot.slane %v171_v17, 2  ;;  %v141_v29 = vadd.f32 %v140_v20, %v76_v13 }
  0x66   :  { %v108_v19 = vld [vmem:[#allocation2 + $0x1b0] sm:$0x1]  ;;  %v187_v25 = vrot.slane %v186_v15, 1  ;;  %v122_v35 = vrot.slane %v121_v26, 1  ;;  %v159_v38 = vrot.slane %v158_v30, 2  ;;  %v210_v39 = vadd.f32 %v209_v31, %v208_v23 }
  0x67   :  { %v104_v28 = vld [vmem:[#allocation2 + $0x190] sm:$0xff]  ;;  %v192_v32 = vadd.f32 %v191_v24, %v100_v18  ;;  %v194_v33 = vsel %vm115_vm0, %v108_v19, 0.0  ;;  %v173_v36 = vadd.f32 %v172_v27, %v171_v17  ;;  %v143_v37 = vadd.f32 %v142_v57, %v141_v29 }
  0x68   :  { %v188_v34 = vadd.f32 %v187_v25, %v186_v15  ;;  %v123_v42 = vadd.f32 %v122_v35, %v121_v26  ;;  %v160_v45 = vadd.f32 %v159_v38, %v158_v30  ;;  %v211_v46 = vrot.slane %v210_v39, 2 }
  0x69   :  { %v193_v40 = vadd.f32 %v192_v32, %v104_v28  ;;  %v174_v43 = vrot.slane %v173_v36, 1  ;;  %v144_v44 = vrot.slane %v143_v37, 4 }
  0x6a   :  { %v296_v41 = vsel %vm294_vm1, %v188_v34, %v136_v21  ;;  %v161_v50 = vrot.slane %v160_v45, 1  ;;  %v212_v51 = vadd.f32 %v211_v46, %v210_v39 }
  0x6b   :  { %367 = vmatprep.mubr.f32.mxu0 %v296_v41  ;;  %v195_v47 = vadd.f32 %v194_v33, %v193_v40  ;;  %v175_v48 = vadd.f32 %v174_v43, %v173_v36  ;;  %v145_v49 = vadd.f32 %v144_v44, %v143_v37 }
  0x6c   :  { %v162_v55 = vadd.f32 %v161_v50, %v160_v45  ;;  %v213_v56 = vrot.slane %v212_v51, 1 }
  0x6d   :  { %v196_v52 = vrot.slane %v195_v47, 4  ;;  %v295_v53 = vsel %vm294_vm1, %v175_v48, %v123_v42  ;;  %v146_v54 = vrot.slane %v145_v49, 2 }
  0x6e   :  { %368 = vmatmul.mubr.f32.vlgmr.msra.gmra.mrb[0].mxu0 %v295_v53  ;;  %v214_v59 = vadd.f32 %v213_v56, %v212_v51 }
  0x6f   :  { %v197_v57 = vadd.f32 %v196_v52, %v195_v47  ;;  %v147_v58 = vadd.f32 %v146_v54, %v145_v49 }
  0x70   :  { %v298_v62 = vsel %vm294_vm1, %v214_v59, %v162_v55 }
  0x71   :  { %v198_v60 = vrot.slane %v197_v57, 2  ;;  %v148_v61 = vrot.slane %v147_v58, 1  ;;  %437 = vmatprep.mubr.f32.mxu1 %v298_v62 }
  0x73   :  { %v199_v63 = vadd.f32 %v198_v60, %v197_v57  ;;  %v149_v0 = vadd.f32 %v148_v61, %v147_v58 }
  0x75   :  { %v200_v1 = vrot.slane %v199_v63, 1 }
  0x77   :  { %v201_v2 = vadd.f32 %v200_v1, %v199_v63 }
  0x79   :  { %v297_v3 = vsel %vm294_vm1, %v201_v2, %v149_v0 }
  0x7a   :  { %438 = vmatmul.mubr.f32.vlgmr.msra.gmra.mrb[0].mxu1 %v297_v3 }
 0x141   :  { %v505_v4 = vpop.f32.mrb[0].mxu0 }
 0x142   :  { %v506_v5 = vpop.f32.mrb[1].mxu0 }
 0x143   :  { %v507_v6 = vadd.f32 %v506_v5, %v505_v4 }
 0x145   :  { %v370_v8 = vadd.f32 %v507_v6, %v472_v7 }
 0x14d   :  { %v540_v9 = vpop.f32.mrb[0].mxu1 }
 0x14e   :  { %v541_v10 = vpop.f32.mrb[1].mxu1 }
 0x14f   :  { %v542_v11 = vadd.f32 %v541_v10, %v540_v9 }
 0x151   :  { %v440_v12 = vadd.f32 %v542_v11, %v370_v8 }
 0x153   :  { %v444_v13 = vsel %vm443_vm2, %v440_v12, -inf }
 0x154   :  { %445 = vmax.xlane.f32.xlu0 %v444_v13 }
 0x1e1   :  { %v446_v14 = vpop.xlane.xlu0 %445 }
 0x1e2   :  { %v447_v15 = vsub.f32 %v440_v12, %v446_v14 }
 0x1e4   :  { %v448_v16 = vmul.f32 1.442695, %v447_v15 }
 0x1e6   :  { %615 = vpow2.f32 %v448_v16 }
 0x1f0   :  { %v616_v17 = vpop.eup %615 }
 0x1f1   :  { %v450_v18 = vsel %vm443_vm2, %v616_v17, 0.0 }
 0x1f2   :  { %451 = vadd.xlane.f32.xlu0 %v450_v18 }
 0x27f   :  { %v452_v19 = vpop.xlane.xlu0 %451 }
 0x280   :  { %617 = vrcp.f32 %v452_v19 }
 0x28a   :  { %v618_v20 = vpop.eup %617 }
 0x28b   :  { %v454_v21 = vmul.f32 %v618_v20, %v616_v17 }
 0x28d   :  { %455 = vst [vmem:[#allocation8] sm:$0x3] %v454_v21 }
 0x28e   :  { %696 = shalt.err (!%p693_p0)
}
 0x28f   :  { %s697_s28 = scalar_lea.hbm %s807_s3, 32 }
 0x290   :  { %p698_p1 = scmp.ne.s32.totalorder %s807_s3, %s697_s28  ;;  %p701_p2 = scmp.lt.u32.totalorder %s697_s28, %s807_s3 }
 0x292   :  { %p703_p3 = pnand %p701_p2, %p698_p1 }
 0x294   :  { %706 = shalt.err (!%p703_p3)
}
 0x295   :  { %465 = dma.vmem_to_hbm [thread:$0]  %s463_s24, 32, %s807_s3, [#allocation4]  }
 0x296   :  { %711 = dma.done.wait [#allocation4], 32  }
 0x297   :  { %712 = vsyncadd [#allocation4], 4294967264 }
 0x298   :  { %469 = vsyncpa [#allocation3], 1 }
 0x299   :  { %470 = vsyncpa [#allocation6], 1 }
 0x29a   :  { %471 = vsyncpa [#allocation4], 1 }

</bundles_post_ra>
